<compile_context>
chip_gen: v6e
topology: v6e:2x2x1
jax: 0.10.0
libtpu: 0.0.40
codegen_flags: <defaults>
</compile_context>

<pallas_src>
import functools

import jax
import jax.numpy as jnp
from jax.experimental import pallas as pl
from jax.experimental.pallas import tpu as pltpu


def conv31_kernel(x_ref, w_ref, p_ref, o_ref, *, width, c_in, c_out):
    # x_ref : (1, C_in, L)      L = B_blk * H * W, samples packed on the lane axis
    # w_ref : (C_out, 3*C_in)   conv weight, kh taps stacked on K, BN2 scale folded
    # p_ref : (Cmax, 3)         col0 = BN1 scale, col1 = BN1 shift (rows :C_in)
    #                           col2 = BN2 shift incl. conv bias (rows :C_out)
    # o_ref : (1, C_out, L)     padded output; the last 2*W lanes of every sample
    #                           are wrap-around garbage and are dropped in wrapper
    lanes = x_ref.shape[2]

    x = x_ref[0]                                   # (C_in, L)
    p = p_ref[...]
    s1 = p[0:c_in, 0:1]                            # (C_in, 1) -> broadcast on lanes
    b1 = p[0:c_in, 1:2]
    b2 = p[0:c_out, 2:3]                           # (C_out, 1)

    # BN1 + sigmoid (VPU + EUP), per-channel params broadcast along lanes.
    a = jax.nn.sigmoid(x * s1 + b1)                # (C_in, L)

    # Stack the three kh taps along the K (sublane) axis.  Tap kh needs
    # a[ci, l + kh*W]; that is a lane rotation of the full 128-aligned slab,
    # which runs on the (otherwise idle) XLU instead of materializing
    # lane-misaligned slice copies.  Positive shift == roll by -kh*W.
    rhs = jnp.concatenate(
        [a,
         pltpu.roll(a, shift=lanes - width, axis=1),
         pltpu.roll(a, shift=lanes - 2 * width, axis=1)],
        axis=0)                                    # (3*C_in, L)

    # One fused MXU matmul (K = 3*C_in) instead of three per-tap matmuls.
    acc = jnp.dot(w_ref[...], rhs, preferred_element_type=jnp.float32)

    # BN2 (scale folded into weight; bias/mean/beta folded into b2),
    # Dropout = identity in eval, final sigmoid.  Full-width, 128-aligned store.
    # TODO(synk): training-mode dropout / batch-statistics BN not implemented.
    o_ref[0] = jax.nn.sigmoid(acc + b2).astype(o_ref.dtype)


def _pick_batch_block(n, s, min_steps=2, max_lanes=32768):
    """Largest divisor of n that keeps >= min_steps grid steps (v7x's two
    TensorCores are only fed via parallel grid sharding) while bounding the
    per-step lane extent (keeps double-buffered VMEM use well inside v5e's
    16 MiB scoped default and v7x's 64 MiB physical VMEM)."""
    cap = max(1, max_lanes // s)
    best = 1
    for b in range(1, min(n, cap) + 1):
        if n % b == 0 and (n // b) >= min_steps:
            best = b
    return best


def conv_3_1_forward(x_nchw, params, eps=1e-5):
    """x_nchw: (N, C_in, H, W) float32  ->  (N, C_out, H-2, W) float32."""
    N, C_in, H, W = x_nchw.shape
    C_out = params["conv_w"].shape[0]
    H_out = H - 2
    S = H * W
    Cmax = max(C_in, C_out)

    B_blk = _pick_batch_block(N, S)
    G = N // B_blk
    L = B_blk * S

    # Fold BN1 / BN2 affine + running stats into per-channel scale/shift (glue).
    s1 = params["bn1_gamma"] / jnp.sqrt(params["bn1_var"] + eps)
    b1 = params["bn1_beta"] - params["bn1_mean"] * s1
    s2 = params["bn2_gamma"] / jnp.sqrt(params["bn2_var"] + eps)
    b2 = params["bn2_beta"] + s2 * (params["conv_b"] - params["bn2_mean"])

    # (C_out, C_in, 3, 1) -> (C_out, 3*C_in) with BN2 scale folded in.
    # K index is kh*C_in + ci, matching the stacked RHS built in the kernel.
    w_flat = jnp.transpose(params["conv_w"][..., 0], (0, 2, 1)).reshape(C_out, 3 * C_in)
    w_flat = w_flat * s2[:, None]

    # Pack the remaining per-channel vectors into one tiny VMEM tile
    # (one DMA / one padded (8,128) tile instead of four).
    p = jnp.zeros((Cmax, 3), jnp.float32)
    p = p.at[:C_in, 0].set(s1).at[:C_in, 1].set(b1).at[:C_out, 2].set(b2)

    # Pack B_blk samples contiguously onto the lane axis: (G, C_in, B_blk*S).
    x_lanes = jnp.transpose(
        x_nchw.reshape(G, B_blk, C_in, S), (0, 2, 1, 3)).reshape(G, C_in, L)

    kernel = functools.partial(conv31_kernel, width=W, c_in=C_in, c_out=C_out)

    out_lanes = pl.pallas_call(
        kernel,
        out_shape=jax.ShapeDtypeStruct((G, C_out, L), x_nchw.dtype),
        grid_spec=pltpu.PrefetchScalarGridSpec(
            num_scalar_prefetch=0,
            grid=(G,),
            in_specs=[
                pl.BlockSpec((1, C_in, L), lambda g: (g, 0, 0)),
                pl.BlockSpec((C_out, 3 * C_in), lambda g: (0, 0)),
                pl.BlockSpec((Cmax, 3), lambda g: (0, 0)),
            ],
            out_specs=pl.BlockSpec((1, C_out, L), lambda g: (g, 0, 0)),
        ),
        # Sample blocks stay on a parallel grid so v7x's 2 TensorCores each
        # take work.  Per-step footprint ~ L*(4*C_in + C_out)*4 B double
        # buffered is < a few MiB even at the lane cap, so the default scoped
        # VMEM limits on v5e/v6e/v7x are ample (no explicit vmem_limit needed).
        compiler_params=pltpu.CompilerParams(dimension_semantics=("parallel",)),
    )(x_lanes, w_flat, p)

    # Unpack lanes -> (N, C_out, H, W) (free-ish layout plumbing at these
    # sizes), then drop the 2*W padded/garbage rows per sample.
    out = jnp.transpose(
        out_lanes.reshape(G, C_out, B_blk, S), (0, 2, 1, 3)).reshape(N, C_out, H, W)
    return out[:, :, :H_out, :]


def reference_forward(x, p, eps=1e-5):
    """Pure-JAX reference with the same (inference) semantics."""
    def bcast(v):
        return v[None, :, None, None]
    a = (x - bcast(p["bn1_mean"])) / jnp.sqrt(bcast(p["bn1_var"]) + eps)
    a = jax.nn.sigmoid(a * bcast(p["bn1_gamma"]) + bcast(p["bn1_beta"]))
    y = jax.lax.conv_general_dilated(
        a, p["conv_w"], window_strides=(1, 1), padding="VALID",
        dimension_numbers=("NCHW", "OIHW", "NCHW")) + bcast(p["conv_b"])
    y = (y - bcast(p["bn2_mean"])) / jnp.sqrt(bcast(p["bn2_var"]) + eps)
    y = y * bcast(p["bn2_gamma"]) + bcast(p["bn2_beta"])
    return jax.nn.sigmoid(y)


if __name__ == "__main__":
    N, C_in, C_out, H, W = 2, 4, 8, 16, 16

    key = jax.random.PRNGKey(0)
    ks = jax.random.split(key, 11)

    params = {
        "bn1_gamma": jax.random.uniform(ks[0], (C_in,), minval=0.5, maxval=1.5),
        "bn1_beta":  0.1 * jax.random.normal(ks[1], (C_in,)),
        "bn1_mean":  0.1 * jax.random.normal(ks[2], (C_in,)),
        "bn1_var":   jax.random.uniform(ks[3], (C_in,), minval=0.5, maxval=1.5),
        "conv_w":    jax.random.normal(ks[4], (C_out, C_in, 3, 1)) / jnp.sqrt(3.0 * C_in),
        "conv_b":    0.1 * jax.random.normal(ks[5], (C_out,)),
        "bn2_gamma": jax.random.uniform(ks[6], (C_out,), minval=0.5, maxval=1.5),
        "bn2_beta":  0.1 * jax.random.normal(ks[7], (C_out,)),
        "bn2_mean":  0.1 * jax.random.normal(ks[8], (C_out,)),
        "bn2_var":   jax.random.uniform(ks[9], (C_out,), minval=0.5, maxval=1.5),
    }
    x = jax.random.normal(ks[10], (N, C_in, H, W), dtype=jnp.float32)

    out = conv_3_1_forward(x, params)
    out = jax.block_until_ready(out)

    ref = jax.block_until_ready(reference_forward(x, params))
    assert out.shape == (N, C_out, H - 2, W), out.shape
    assert jnp.allclose(out, ref, atol=2e-5, rtol=2e-5), float(jnp.max(jnp.abs(out - ref)))

    print("KERNEL_OK")
</pallas_src>

<mosaic_0001>
module attributes {stable_mosaic.version = 11 : i64} {
  func.func @conv31_kernel(%arg0: i32, %arg1: memref<1x4x256xf32, #tpu.memory_space<vmem>>, %arg2: memref<8x12xf32, #tpu.memory_space<vmem>>, %arg3: memref<8x3xf32, #tpu.memory_space<vmem>>, %arg4: memref<1x8x256xf32, #tpu.memory_space<vmem>>) attributes {dimension_semantics = [#tpu.dimension_semantics<parallel>], iteration_bounds = array<i64: 2>, scalar_prefetch = 0 : i64, scratch_operands = 0 : i64, tpu.core_type = #tpu.core_type<tc>, window_params = [{transform_indices = @transform_0, window_bounds = array<i64: 1, 4, 256>}, {pipeline_mode = #tpu.pipeline_mode<synchronous>, transform_indices = @transform_1, window_bounds = array<i64: 8, 12>}, {pipeline_mode = #tpu.pipeline_mode<synchronous>, transform_indices = @transform_2, window_bounds = array<i64: 8, 3>}, {transform_indices = @transform_3, window_bounds = array<i64: 1, 8, 256>}]} {
    %c0 = arith.constant 0 : index
    %c0_0 = arith.constant 0 : index
    %c0_1 = arith.constant 0 : index
    %0 = vector.load %arg1[%c0, %c0_0, %c0_1] : memref<1x4x256xf32, #tpu.memory_space<vmem>>, vector<1x4x256xf32>
    %1 = vector.shape_cast %0 : vector<1x4x256xf32> to vector<4x256xf32>
    %c0_2 = arith.constant 0 : index
    %c0_3 = arith.constant 0 : index
    %2 = vector.load %arg3[%c0_2, %c0_3] : memref<8x3xf32, #tpu.memory_space<vmem>>, vector<8x3xf32>
    %3 = vector.extract_strided_slice %2 {offsets = [0, 0], sizes = [4, 1], strides = [1, 1]} : vector<8x3xf32> to vector<4x1xf32>
    %4 = vector.extract_strided_slice %2 {offsets = [0, 1], sizes = [4, 1], strides = [1, 1]} : vector<8x3xf32> to vector<4x1xf32>
    %5 = vector.extract_strided_slice %2 {offsets = [0, 2], sizes = [8, 1], strides = [1, 1]} : vector<8x3xf32> to vector<8x1xf32>
    %6 = vector.broadcast %3 : vector<4x1xf32> to vector<4x256xf32>
    %7 = arith.mulf %1, %6 : vector<4x256xf32>
    %8 = vector.broadcast %4 : vector<4x1xf32> to vector<4x256xf32>
    %9 = arith.addf %7, %8 : vector<4x256xf32>
    %10 = arith.negf %9 : vector<4x256xf32>
    %11 = math.exp %10 : vector<4x256xf32>
    %cst = arith.constant 1.000000e+00 : f32
    %12 = vector.broadcast %cst : f32 to vector<4x256xf32>
    %13 = arith.addf %12, %11 : vector<4x256xf32>
    %14 = arith.divf %12, %13 : vector<4x256xf32>
    %c240_i32 = arith.constant 240 : i32
    %15 = tpu.dynamic_rotate %14 by %c240_i32 dim 1 : vector<4x256xf32>, i32 -> vector<4x256xf32>
    %c224_i32 = arith.constant 224 : i32
    %16 = tpu.dynamic_rotate %14 by %c224_i32 dim 1 : vector<4x256xf32>, i32 -> vector<4x256xf32>
    %17 = tpu.concatenate %14, %15, %16 in 0 : vector<4x256xf32>, vector<4x256xf32>, vector<4x256xf32> -> vector<12x256xf32>
    %c0_4 = arith.constant 0 : index
    %c0_5 = arith.constant 0 : index
    %18 = vector.load %arg2[%c0_4, %c0_5] : memref<8x12xf32, #tpu.memory_space<vmem>>, vector<8x12xf32>
    %cst_6 = arith.constant dense<0.000000e+00> : vector<8x256xf32>
    %19 = tpu.matmul %18, %17, %cst_6 {dimension_numbers = #tpu.dot_dimension_numbers<[1], [0], [0], [1], [0, 0, 1, 1], [], []>} : vector<8x12xf32>, vector<12x256xf32>, vector<8x256xf32> -> vector<8x256xf32>
    %20 = vector.broadcast %5 : vector<8x1xf32> to vector<8x256xf32>
    %21 = arith.addf %19, %20 : vector<8x256xf32>
    %22 = arith.negf %21 : vector<8x256xf32>
    %23 = math.exp %22 : vector<8x256xf32>
    %cst_7 = arith.constant 1.000000e+00 : f32
    %24 = vector.broadcast %cst_7 : f32 to vector<8x256xf32>
    %25 = arith.addf %24, %23 : vector<8x256xf32>
    %26 = arith.divf %24, %25 : vector<8x256xf32>
    %c0_8 = arith.constant 0 : index
    %c0_9 = arith.constant 0 : index
    %c0_10 = arith.constant 0 : index
    %27 = vector.load %arg4[%c0_8, %c0_9, %c0_10] : memref<1x8x256xf32, #tpu.memory_space<vmem>>, vector<1x8x256xf32>
    %28 = vector.shape_cast %27 : vector<1x8x256xf32> to vector<8x256xf32>
    %29 = vector.shape_cast %26 : vector<8x256xf32> to vector<1x8x256xf32>
    tpu.vector_store %arg4[%c0_8, %c0_9, %c0_10], %29 {strides = array<i32>} : memref<1x8x256xf32, #tpu.memory_space<vmem>>, vector<1x8x256xf32>,
    return
  }
  func.func @transform_0(%arg0: i32) -> (i32, i32, i32) {
    %c0_i32 = arith.constant 0 : i32
    %c0_i32_0 = arith.constant 0 : i32
    %c0_i32_1 = arith.constant 0 : i32
    return %arg0, %c0_i32, %c0_i32_0 : i32, i32, i32
  }
  func.func @transform_1(%arg0: i32) -> (i32, i32) {
    %c0_i32 = arith.constant 0 : i32
    %c0_i32_0 = arith.constant 0 : i32
    %c0_i32_1 = arith.constant 0 : i32
    return %c0_i32, %c0_i32_0 : i32, i32
  }
  func.func @transform_2(%arg0: i32) -> (i32, i32) {
    %c0_i32 = arith.constant 0 : i32
    %c0_i32_0 = arith.constant 0 : i32
    %c0_i32_1 = arith.constant 0 : i32
    return %c0_i32, %c0_i32_0 : i32, i32
  }
  func.func @transform_3(%arg0: i32) -> (i32, i32, i32) {
    %c0_i32 = arith.constant 0 : i32
    %c0_i32_0 = arith.constant 0 : i32
    %c0_i32_1 = arith.constant 0 : i32
    return %arg0, %c0_i32, %c0_i32_0 : i32, i32, i32
  }
}

</mosaic_0001>

<bundles_post_ra>
// kernel: tpu_custom_call.1
= control target key start
LH: loop header
LB: loop body
LE: loop exit
PB: predicated region body
PF: predicated region fallthrough
CT: control target
= control target key end

     0   :  { %8 = vsyncpa [#allocation3], 0  ;;  %s801_s0 = inlined_call_operand.hbm [shape: f32[2,4,256], index: 0, kind: input, shape index: {}]   ;;  %s802_s1 = inlined_call_operand.vmem [shape: f32[8,12], index: 1, kind: input, shape index: {}]   ;;  %s803_s2 = inlined_call_operand.vmem [shape: f32[8,3], index: 2, kind: input, shape index: {}]   ;;  %s804_s3 = inlined_call_operand.hbm [shape: f32[2,8,256], index: 3, kind: output, shape index: {}]  }
   0x1   :  { %10 = vsyncpa [#allocation3 + $0x1], 0 }
   0x2   :  { %11 = vsyncpa [#allocation4], 0 }
   0x3   :  { %13 = vsyncpa [#allocation4 + $0x1], 0  ;;  %s647_s12 = smov 0   ;;  %s649_s13 = smov 0  }
   0x4   :  { %s651_s14 = smov 0   ;;  %s653_s15 = smov 0  }
   0x5 LB: > { %s668_s16 = sadd.s32 4294967295, %s616_s15   ;;  %s433_s17 = sadd.s32 4294967294, %s616_s15   ;;  %s616_s15 = sphi %s653_s15, %s821_s15   ;;  %s612_s14 = sphi %s651_s14, %s820_s14   ;;  %s608_s13 = sphi %s649_s13, %s819_s13   ;;  %s604_s12 = sphi %s647_s12, %s818_s12  }
   0x6   : > { %s672_s18 = sadd.s32 1, %s616_s15   ;;  %s26_s19 = sadd.s32 1, %s612_s14 }
   0x7   : > { %s23_s20 = ssub.s32 %s616_s15, %s672_s18  ;;  %p33_p0 = scmp.ne.s32.totalorder %s612_s14, %s608_s13 }
   0x8   : > { %p24_p1 = scmp.eq.s32.totalorder %s23_s20, 0  ;;  %p34_p2 = scmp.eq.s32.totalorder %s616_s15, 0 }
   0x9   : > { %p39_p3 = scmp.ne.s32.totalorder %s608_s13, %s604_s12  ;;  %p40_p4 = scmp.eq.s32.totalorder %s668_s16, 0 }
   0xa   : > { %s684_s21 = scalar_select %p24_p1, %s612_s14, %s26_s19  }
   0xb   : > { %p686_p5 = por %p34_p2, %p33_p0  ;;  %p690_p6 = por %p40_p4, %p39_p3 }
   0xc   : > { %p105_p7 = scmp.eq.s32.totalorder %s668_s16, 1  ;;  %p111_p8 = scmp.eq.s32.totalorder %s433_s17, 1 }
   0xd   : > { %s808_s23 = scalar_select %p690_p6, 1, 0 }
   0xe   : > { %p467_p10 = scmp.lt.s32.totalorder %s616_s15, 2  ;;  %p697_p11 = por %p105_p7, %p33_p0 }
   0xf   : > { %p701_p12 = por %p111_p8, %p39_p3  ;;  %s137_s26 = sand.u32 1, %s612_s14  }
  0x10   : > { %s809_s24 = scalar_select %p697_p11, 1, 0 }
  0x11   : > { %s810_s25 = scalar_select %p701_p12, 1, 0 }
  0x12   : > { %s453_s27 = sshll.u32 %s616_s15, 7  ;;  %s436_s28 = sshll.u32 %s137_s26, 3 }
  0x13   : > { %s710_s4 = scalar_lea.hbm %s801_s0, %s453_s27  ;;  %s141_s5 = scalar_lea.vmem [#allocation2], %s436_s28 }
  0x14   : > { %s149_s6 = sshll.u32 %s141_s5, 4  ;;  %p714_p13 = pnand %p467_p10, %p686_p5  ;;  %s718_s6 = int_to_ptr.vmem [resolvable:$true] %s149_s6 }
  0x15   : > { %s138_s8 = scalar_lea.sflag [#allocation3], %s137_s26  ;;  %s524_s9 = scalar_lea.hbm %s710_s4, 128 }
  0x16   : > { %p525_p2 = scmp.ne.s32.totalorder %s710_s4, %s524_s9  ;;  %p526_p3 = pneg %p714_p13 }
  0x17   : > { %s529_s17 = scalar_lea.hbm %s801_s0, 256  ;;  %p530_p5 = scmp.lt.s32.totalorder %s710_s4, %s801_s0 }
  0x18   : > { %p527_p4 = pnand %p526_p3, %p525_p2  ;;  %p531_p8 = scmp.lt.s32.totalorder %s529_s17, %s524_s9 }
  0x1a   : > { %p528_p7 = pneg %p527_p4  ;;  %p532_p10 = por %p531_p8, %p530_p5 }
  0x1c   : > { %p533_p9 = pnand %p532_p10, %p528_p7 }
  0x1e   : > { %536 = shalt.err (!%p533_p9)
}
  0x1f   : > { %s537_s22 = scalar_lea.vmem %s718_s6, 128  ;;  %s618_s26 = smov [#allocation2]  }
  0x20   : > { %p538_p0 = scmp.ne.s32.totalorder %s718_s6, %s537_s22  ;;  %s542_s27 = sshll.u32 %s618_s26, 4  ;;  %s543_s27 = int_to_ptr.vmem [resolvable:$false] %s542_s27 }
  0x21   : > { %s544_s28 = scalar_lea.vmem %s543_s27, 256  ;;  %p545_p4 = scmp.lt.s32.totalorder %s718_s6, %s543_s27 }
  0x22   : > { %p540_p1 = pnand %p538_p0, %p526_p3  ;;  %p546_p12 = scmp.lt.s32.totalorder %s544_s28, %s537_s22 }
  0x24   : > { %p541_p2 = pneg %p540_p1  ;;  %p547_p11 = por %p546_p12, %p545_p4 }
  0x26   : > { %p548_p6 = pnand %p547_p11, %p541_p2 }
  0x28   : > { %551 = shalt.err (!%p548_p6)
}
  0x29   : > { %462 = dma.hbm_to_vmem [thread:$0]  (!%p714_p13), %s710_s4, 128, %s718_s6, %s138_s8  }
  0x2a   : > { %p812_p9 = scmp.lt.s32.totalorder %s616_s15, 3  ;;  %p813_p7 = scmp.ge.s32.totalorder %s616_s15, 1 }
  0x2c   : > { %p155_p0 = pnand %p813_p7, %p812_p9 }
  0x2d   : > { %s745_s29 = sand.u32 (!%p155_p0), 1, %s608_s13   ;;  %p814_p6 = scmp.ne.s32.totalorder (!%p155_p0), %s808_s23, 0 }
  0x2e   : > { %158 = sbr.rel (%p155_p0) target bundleno = 589 (0x24d), region = 32  ;;  %s440_s30 = sshll.u32 (!%p155_p0), %s745_s29, 3 }
  0x2f   : > { %s161_s5 = scalar_lea.sflag (!%p155_p0), [#allocation3], %s745_s29  ;;  %s164_s9 = scalar_lea.vmem (!%p155_p0), [#allocation2], %s440_s30 }
  0x33   : > { %595 = dma.done.wait (%p814_p6), %s161_s5, 128  }
  0x34   : > { %597 = vsyncadd (%p814_p6), %s161_s5, 4294967168  ;;  %v619_v0 = vmov 0   ;;  %v188_v1 = vld [vmem:[%s803_s2] sm:$0xff]  ;;  %v620_v2 = vmov 1   ;;  %v621_v3 = vmov 839922192   ;;  %v196_v5 = vlaneseq }
  0x35   : > { %508 = vset.pattern.permute.xlu0 %v619_v0  ;;  %v194_v4 = vunpack.c.l.s4 %v621_v3  ;;  %v187_v11 = vld [vmem:[%s164_s9] sm:$0xff]  ;;  %v622_v20 = vmov 0.0   ;;  %s623_s23 = smov 112   ;;  %v624_v22 = vmov 2   ;;  %s625_s7 = smov 96   ;;  %vm245_vm2 = vcmask 1043456  }
  0x36   : > { %191 = vperm.xlu0 %508, %v188_v1   ;;  %v197_v7 = vshrl.u32 %v196_v5, 7  ;;  %327 = vmatprep.mubr.f32.mxu0 %v622_v20  ;;  %v228_v23 = vand.u32 127, %v196_v5  ;;  %v248_v35 = vld [vmem:[%s802_s1] sm:$0xff]  ;;  %vm253_vm3 = vcmask 97280   ;;  %s441_s11 = sshll.u32 %s745_s29, 4  ;;  %s454_s17 = sshll.u32 %s668_s16, 8 }
  0x37   : > { %v195_v6 = vunpack.c.0.s8 %v194_v4  ;;  %510 = vset.pattern.permute.xlu1 %v624_v22  ;;  %s186_s19 = scalar_lea.vmem [#allocation5], %s441_s11  ;;  %s764_s27 = scalar_lea.hbm %s804_s3, %s454_s17 }
  0x38   : > { %vm229_vm0 = vcmp.lt.s32.totalorder %v228_v23, 112  ;;  %vm236_vm1 = vcmp.lt.s32.totalorder %v228_v23, 96  ;;  %s363_s20 = sshll.u32 %s186_s19, 4  ;;  %s349_s28 = scalar_lea.sflag [#allocation4], %s745_s29  ;;  %s364_s20 = int_to_ptr.vmem [resolvable:$true] %s363_s20 }
  0x39   : > { %v198_v8 = vsub.s32 %v195_v6, %v197_v7  ;;  %s552_s30 = scalar_lea.vmem %s364_s20, 256  ;;  %p815_p12 = scmp.ne.s32.totalorder %s809_s24, 0 }
  0x3a   : > { %509 = vset.pattern.permute.xlu0 %v620_v2  ;;  %p553_p11 = scmp.ne.s32.totalorder %s364_s20, %s552_s30  ;;  %s626_s5 = smov [#allocation5]  }
  0x3b   : > { %203 = vperm.xlu0 %509, %v188_v1   ;;  %s556_s16 = sshll.u32 %s626_s5, 4  ;;  %s557_s16 = int_to_ptr.vmem [resolvable:$false] %s556_s16 }
  0x3c   : > { %p554_p13 = pnand %p553_p11, %p815_p12  ;;  %s558_s9 = scalar_lea.vmem %s557_s16, 512 }
  0x3d   : > { %p559_p3 = scmp.lt.s32.totalorder %s364_s20, %s557_s16  ;;  %p560_p5 = scmp.lt.s32.totalorder %s558_s9, %s552_s30 }
  0x3e   : > { %p555_p1 = pneg %p554_p13 }
  0x3f   : > { %511 = vset.pattern.permute.xlu0 %v624_v22  ;;  %p561_p8 = por %p560_p5, %p559_p3 }
  0x41   : > { %p562_p10 = pnand %p561_p8, %p555_p1 }
  0xb1   : > { %v192_v9 = vpop.permute.xlu0 %191 }
  0xb2   : > { %v199_v10 = vrot.slane %v192_v9, %v198_v8 }
  0xb4   : > { %v201_v13 = vmul.f32 %v199_v10, %v187_v11 }
  0xb6   : > { %v204_v12 = vpop.permute.xlu0 %203 }
  0xb7   : > { %v211_v14 = vrot.slane %v204_v12, %v198_v8 }
  0xb9   : > { %v213_v15 = vadd.f32 %v211_v14, %v201_v13 }
  0xbb   : > { %v442_v16 = vmul.f32 -1.442695, %v213_v15 }
  0xbd   : > { %512 = vpow2.f32 %v442_v16 }
  0xca   : > { %v513_v17 = vpop.eup %512 }
  0xcb   : > { %v217_v18 = vadd.f32 1.0, %v513_v17 }
  0xcd   : > { %514 = vrcp.f32 %v217_v18 }
  0xda   : > { %v515_v19 = vpop.eup %514 }
  0xdb   : > { %223 = vrot.lane.b32.xlu1 %v515_v19, %s623_s23  ;;  %v221_v21 = vcombine.high %v515_v19, %v515_v19 }
  0xdd   : > { %234 = vrot.lane.b32.xlu0 %v221_v21, %s625_s7 }
  0xdf   : > { %225 = vrot.lane.b32.xlu1 %v221_v21, %s623_s23 }
  0xe3   : > { %232 = vrot.lane.b32.xlu1 %v515_v19, %s625_s7 }
  0xe7   : > { %250 = vperm.xlu1 %510, %v188_v1  }
 0x14d   : > { %v224_v24 = vpop.permute.xlu1 %223 }
 0x14f   : > { %v235_v29 = vpop.permute.xlu0 %234 }
 0x151   : > { %v226_v25 = vpop.permute.xlu1 %225 }
 0x152   : > { %v230_v26 = vsel %vm229_vm0, %v224_v24, %v226_v25  ;;  %v231_v27 = vsel %vm229_vm0, %v226_v25, %v224_v24 }
 0x153   : > { %v242_v28 = vrot.slane %v231_v27, 4  ;;  %v241_v30 = vrot.slane %v230_v26, 4 }
 0x155   : > { %v233_v31 = vpop.permute.xlu1 %232  ;;  %v247_v34 = vsel %vm245_vm2, %v221_v21, %v242_v28  ;;  %v246_v36 = vsel %vm245_vm2, %v515_v19, %v241_v30 }
 0x156   : > { %v238_v32 = vsel %vm236_vm1, %v235_v29, %v233_v31  ;;  %v237_v33 = vsel %vm236_vm1, %v233_v31, %v235_v29 }
 0x157   : > { %443 = vmatprep.subr.msk.mxu0 %vm245_vm2, %v238_v32 }
 0x158   : > { %444 = vmatpush1.msk.msra.mxu0 %vm245_vm2, %v237_v33 }
 0x159   : > { %293 = vmatprep.subr.mxu0 %v247_v34 }
 0x15a   : > { %294 = vmatpush1.msra.mxu0 %v246_v36 }
 0x15b   : > { %445 = vmatmul.mubr.msk.f32.vlgmr.msra.gmra.mxu0 %vm253_vm3, %v248_v35 }
 0x162   : > { %v251_v37 = vpop.permute.xlu1 %250 }
 0x21b   : > { %v329_v38 = vpop.f32.mrf.mxu0 }
 0x21c   : > { %v330_v39 = vadd.f32 %v329_v38, %v251_v37 }
 0x21d   : > { %v331_v40 = vpop.f32.mrf.mxu0 }
 0x21e   : > { %v446_v41 = vmul.f32 -1.442695, %v330_v39  ;;  %v332_v42 = vadd.f32 %v331_v40, %v251_v37 }
 0x220   : > { %516 = vpow2.f32 %v446_v41  ;;  %v447_v43 = vmul.f32 -1.442695, %v332_v42 }
 0x222   : > { %518 = vpow2.f32 %v447_v43 }
 0x22d   : > { %v517_v44 = vpop.eup %516 }
 0x22e   : > { %v340_v45 = vadd.f32 1.0, %v517_v44 }
 0x22f   : > { %v519_v46 = vpop.eup %518 }
 0x230   : > { %520 = vrcp.f32 %v340_v45  ;;  %v341_v47 = vadd.f32 1.0, %v519_v46 }
 0x232   : > { %522 = vrcp.f32 %v341_v47 }
 0x23d   : > { %v521_v48 = vpop.eup %520 }
 0x23e   : > { %346 = vst [vmem:[%s186_s19] sm:$0xff] %v521_v48 }
 0x23f   : > { %v523_v49 = vpop.eup %522 }
 0x240   : > { %347 = vst [vmem:[%s186_s19 + $0x8] sm:$0xff] %v523_v49 }
 0x241   : > { %565 = shalt.err (!%p562_p10)
}
 0x242   : > { %s566_s4 = scalar_lea.hbm %s764_s27, 256  ;;  %s570_s23 = scalar_lea.hbm %s804_s3, 512 }
 0x243   : > { %p567_p2 = scmp.ne.s32.totalorder %s764_s27, %s566_s4  ;;  %p571_p7 = scmp.lt.s32.totalorder %s764_s27, %s804_s3 }
 0x244   : > { %p572_p0 = scmp.lt.s32.totalorder %s570_s23, %s566_s4 }
 0x245   : > { %p568_p4 = pnand %p567_p2, %p815_p12 }
 0x246   : > { %p573_p6 = por %p572_p0, %p571_p7 }
 0x247   : > { %p569_p9 = pneg %p568_p4 }
 0x249   : > { %p574_p11 = pnand %p573_p6, %p569_p9 }
 0x24b   : > { %577 = shalt.err (!%p574_p11)
}
 0x24c   : > { %457 = dma.vmem_to_hbm [thread:$0]  (%p815_p12), %s364_s20, 256, %s764_s27, %s349_s28  }
 0x24d PF: > { %s375_s10 = sand.u32 1, %s604_s12   ;;  %p816_p13 = scmp.ne.s32.totalorder %s810_s25, 0 }
 0x24e   : > { %p817_p1 = scmp.ge.s32.totalorder %s616_s15, 2  ;;  %s376_s11 = scalar_lea.sflag [#allocation4], %s375_s10 }
 0x250   : > { %p464_p3 = pnand %p817_p1, %p816_p13 }
 0x252   : > { %p465_p5 = pneg %p464_p3 }
 0x254   : > { %599 = dma.done.wait (%p465_p5), %s376_s11, 256  }
 0x255   : > { %601 = vsyncadd (%p465_p5), %s376_s11, 4294967040  ;;  %p16_p8 = scmp.ge.s32.totalorder %s672_s18, 4   ;;  %s818_s12 = smov %s608_s13 }
 0x256   : > { %s819_s13 = smov %s612_s14  ;;  %s820_s14 = smov %s684_s21 }
 0x257   : > { %s821_s15 = smov %s672_s18  ;;  %18 = sbr.rel (!%p16_p8) target bundleno = 5 (0x5), region = 77 }
 0x25c   :  { %381 = vsyncpa [#allocation3], 1 }
 0x25d   :  { %383 = vsyncpa [#allocation3 + $0x1], 1 }
 0x25e   :  { %384 = vsyncpa [#allocation4], 1 }
 0x25f   :  { %386 = vsyncpa [#allocation4 + $0x1], 1 }

</bundles_post_ra>
